<compile_context>
chip_gen: v6e
topology: v6e:2x2x1
jax: 0.10.0
libtpu: 0.0.40
codegen_flags: <defaults>
</compile_context>

<pallas_src>
import jax
import jax.numpy as jnp
from jax.experimental import pallas as pl
from jax.experimental.pallas import tpu as pltpu


def _bow_kernel(x_ref, emb_hi_ref, emb_lo_ref, o_ref):
    # x_ref     : (1, 3, P_tile) f32   raw BOW planes (pre-offset)
    # emb_hi_ref: (3, D, MVpad)  bf16  per-channel table slabs (hi bf16 part)
    # emb_lo_ref: (3, D, MVpad)  bf16  residual (lo) part -> near-f32 table
    # o_ref     : (1, D, P_tile)       summed embeddings, channels-first
    x = x_ref[0]                                   # (3, P_tile)
    mv_pad = emb_hi_ref.shape[2]
    pt = x.shape[1]
    d = o_ref.shape[1]

    # Per-slab vocab index along sublanes; shared by all 3 channels because the
    # table was pre-split per channel (no +c*max_value offset needed).
    vocab_iota = jax.lax.broadcasted_iota(
        jnp.int32, (mv_pad, pt), 0).astype(jnp.float32)

    acc = jnp.zeros((d, pt), jnp.float32)
    for c in range(3):                             # statically unrolled
        # torch does (inputs + c*max_value).long(): floor == trunc for the
        # non-negative symbol values this module is defined on.  Out-of-range
        # values match no vocab row and contribute zero for that channel.
        xc = jnp.floor(x[c:c + 1, :])              # (1, P_tile), sublane-bcast
        onehot = (vocab_iota == xc).astype(jnp.bfloat16)   # (MVpad, P_tile)
        # (D, MVpad) @ (MVpad, P_tile) on the MXU, f32 accumulation.
        acc = acc + jnp.dot(emb_hi_ref[c], onehot,
                            preferred_element_type=jnp.float32)
        acc = acc + jnp.dot(emb_lo_ref[c], onehot,
                            preferred_element_type=jnp.float32)
    o_ref[0] = acc.astype(o_ref.dtype)


def _vmem_capacity_bytes():
    """Physical VMEM of the current chip (conservative 64 MiB fallback)."""
    try:
        return int(pltpu.get_tpu_info().vmem_capacity_bytes)
    except Exception:
        return 64 << 20                            # v7x per-TC (smallest gen)


def _pick_p_tile(B, P, mv_pad, D, vmem_cap):
    """Pixel tile: multiple of 128, VMEM-budgeted, >= 2 grid steps overall."""
    p128 = pl.cdiv(P, 128) * 128                   # lane-aligned pixel count

    # Bytes of VMEM needed per output lane (pipelined buffers + kernel temps).
    bytes_per_lane = (
        2 * 12            # input f32 tile, double-buffered
        + 2 * 4 * D       # output f32 tile, double-buffered
        + 6 * mv_pad      # f32 iota + bf16 one-hot (one channel at a time)
        + 4 * D           # f32 accumulator
        + 16)             # slack
    budget = vmem_cap // 2                         # leave room for tables etc.
    cap = min(8192, p128, max(128, budget // bytes_per_lane))
    cap -= cap % 128
    cap = max(cap, 128)

    # Prefer a 128-multiple divisor of p128 (no padding waste) when one exists
    # that is not much smaller than the budgeted cap.
    t = cap
    while t > 128 and p128 % t != 0:
        t -= 128
    if t < max(128, cap // 2):
        t = cap                                    # accept < one tile of padding

    # v7x has 2 TensorCores; both grid axes are "parallel", so make sure there
    # are at least 2 grid steps to shard (costs ~0.35us on single-TC parts).
    while B * pl.cdiv(p128, t) < 2 and t > 128:
        t = max(128, ((t // 2) // 128) * 128)
    return t


def _vmem_limit_bytes(p_tile, mv_pad, D, vmem_cap):
    est = (
        2 * (3 * p_tile * 4)                       # input tile, double-buffered
        + 2 * (D * p_tile * 4)                     # output tile, double-buffered
        + 2 * 2 * (3 * D * max(mv_pad, 128) * 2)   # hi+lo bf16 tables (lane-padded)
        + mv_pad * p_tile * (4 + 2)                # f32 iota + bf16 one-hot temps
        + D * p_tile * 4                           # f32 accumulator
        + (4 << 20))                               # compiler headroom
    # 64 MiB-VMEM parts (v7x): stay well under physical; 128 MiB parts: ~96 MiB.
    cap = (48 << 20) if vmem_cap <= (64 << 20) else (96 << 20)
    return int(min(cap, max(32 << 20, 2 * est)))


def image_bow_embedding(inputs, embedding, max_value, *, out_dtype=jnp.float32):
    """inputs: (B, 3, H, W) float; embedding: (3*max_value, D) float.

    Returns (B, D, H, W) `out_dtype`, matching the PyTorch module forward
    (bf16 hi+lo table split on the MXU -> near-f32 table precision).
    """
    B, C, H, W = inputs.shape
    assert C == 3, "ImageBOWEmbedding expects 3 channels"
    V, D = embedding.shape
    assert V == 3 * max_value
    P = H * W

    mv_pad = max(8, pl.cdiv(max_value, 8) * 8)     # sublane-align vocab slab
    vmem_cap = _vmem_capacity_bytes()
    p_tile = _pick_p_tile(B, P, mv_pad, D, vmem_cap)
    P_pad = pl.cdiv(P, p_tile) * p_tile
    n_p = P_pad // p_tile

    x_flat = inputs.reshape(B, 3, P).astype(jnp.float32)
    if P_pad != P:
        # Pad the pixel axis; -1 matches no vocab row, and the padded output
        # lanes are sliced away below.
        x_flat = jnp.pad(x_flat, ((0, 0), (0, 0), (0, P_pad - P)),
                         constant_values=-1.0)

    # Per-channel vocab slabs, transposed to (3, D, mv_pad); hi/lo bf16 split
    # recovers near-f32 table precision on the bf16 MXU (MXU is not the
    # bottleneck, so the extra 3 small dots are free).
    emb3 = embedding.astype(jnp.float32).reshape(3, max_value, D)
    if mv_pad != max_value:
        emb3 = jnp.pad(emb3, ((0, 0), (0, mv_pad - max_value), (0, 0)))
    emb3_t = jnp.transpose(emb3, (0, 2, 1))        # (3, D, mv_pad)
    emb_hi = emb3_t.astype(jnp.bfloat16)
    emb_lo = (emb3_t - emb_hi.astype(jnp.float32)).astype(jnp.bfloat16)

    out = pl.pallas_call(
        _bow_kernel,
        out_shape=jax.ShapeDtypeStruct((B, D, P_pad), out_dtype),
        grid_spec=pltpu.PrefetchScalarGridSpec(
            num_scalar_prefetch=0,
            grid=(B, n_p),
            in_specs=[
                pl.BlockSpec((1, 3, p_tile), lambda b, p: (b, 0, p)),
                pl.BlockSpec((3, D, mv_pad), lambda b, p: (0, 0, 0)),
                pl.BlockSpec((3, D, mv_pad), lambda b, p: (0, 0, 0)),
            ],
            out_specs=pl.BlockSpec((1, D, p_tile), lambda b, p: (b, 0, p)),
        ),
        compiler_params=pltpu.CompilerParams(
            dimension_semantics=("parallel", "parallel"),
            vmem_limit_bytes=_vmem_limit_bytes(p_tile, mv_pad, D, vmem_cap)),
    )(x_flat, emb_hi, emb_lo)

    if P_pad != P:
        out = out[:, :, :P]
    # (B, D, P) -> (B, D, H, W): free reshape, no transpose needed.
    return out.reshape(B, D, H, W)


def _reference(inputs, embedding, max_value):
    offsets = jnp.array([0, max_value, 2 * max_value], jnp.float32)
    idx = (inputs + offsets[None, :, None, None]).astype(jnp.int32)
    emb = embedding[idx]               # (B, 3, H, W, D)
    emb = emb.sum(axis=1)              # (B, H, W, D)
    return jnp.transpose(emb, (0, 3, 1, 2))


if __name__ == "__main__":
    key = jax.random.PRNGKey(0)
    k_in, k_emb = jax.random.split(key)

    B, H, W = 2, 16, 16
    max_value = 8
    embedding_dim = 32

    # Symbolic image: integer-valued floats in [0, max_value), NCHW with C=3.
    inputs = jax.random.randint(
        k_in, (B, 3, H, W), minval=0, maxval=max_value).astype(jnp.float32)

    # nn.Embedding(3*max_value, embedding_dim) default init ~ N(0, 1)
    # (the module's initialize_parameters only touches Linear layers).
    embedding = jax.random.normal(
        k_emb, (3 * max_value, embedding_dim), dtype=jnp.float32)

    out = image_bow_embedding(inputs, embedding, max_value)
    out = jax.block_until_ready(out)

    assert out.shape == (B, embedding_dim, H, W)

    # hi+lo bf16 table split -> near-f32 parity with the PyTorch semantics
    # (one-hot side is exact; residual table error is O(1e-4)).
    ref_f32 = _reference(inputs, embedding, max_value)
    assert jnp.allclose(out, ref_f32, atol=1e-3, rtol=1e-3)

    print("KERNEL_OK")
</pallas_src>

<mosaic_0001>
module attributes {stable_mosaic.version = 11 : i64} {
  func.func @_bow_kernel(%arg0: i32, %arg1: i32, %arg2: memref<1x3x256xf32, #tpu.memory_space<vmem>>, %arg3: memref<3x32x8xbf16, #tpu.memory_space<vmem>>, %arg4: memref<3x32x8xbf16, #tpu.memory_space<vmem>>, %arg5: memref<1x32x256xf32, #tpu.memory_space<vmem>>) attributes {dimension_semantics = [#tpu.dimension_semantics<parallel>, #tpu.dimension_semantics<parallel>], iteration_bounds = array<i64: 2, 1>, scalar_prefetch = 0 : i64, scratch_operands = 0 : i64, tpu.core_type = #tpu.core_type<tc>, window_params = [{transform_indices = @transform_0, window_bounds = array<i64: 1, 3, 256>}, {pipeline_mode = #tpu.pipeline_mode<synchronous>, transform_indices = @transform_1, window_bounds = array<i64: 3, 32, 8>}, {pipeline_mode = #tpu.pipeline_mode<synchronous>, transform_indices = @transform_2, window_bounds = array<i64: 3, 32, 8>}, {transform_indices = @transform_3, window_bounds = array<i64: 1, 32, 256>}]} {
    %c0 = arith.constant 0 : index
    %c0_0 = arith.constant 0 : index
    %c0_1 = arith.constant 0 : index
    %0 = vector.load %arg2[%c0, %c0_0, %c0_1] : memref<1x3x256xf32, #tpu.memory_space<vmem>>, vector<1x3x256xf32>
    %1 = vector.shape_cast %0 : vector<1x3x256xf32> to vector<3x256xf32>
    %2 = tpu.iota {dimensions = array<i32: 0>} : vector<8x256xi32>
    %3 = arith.sitofp %2 : vector<8x256xi32> to vector<8x256xf32>
    %cst = arith.constant 0.000000e+00 : f32
    %4 = vector.broadcast %cst : f32 to vector<32x256xf32>
    %5 = vector.extract_strided_slice %1 {offsets = [0, 0], sizes = [1, 256], strides = [1, 1]} : vector<3x256xf32> to vector<1x256xf32>
    %6 = math.floor %5 : vector<1x256xf32>
    %7 = vector.broadcast %6 : vector<1x256xf32> to vector<8x256xf32>
    %8 = arith.cmpf oeq, %3, %7 : vector<8x256xf32>
    %9 = arith.extui %8 : vector<8x256xi1> to vector<8x256xi32>
    %10 = arith.sitofp %9 : vector<8x256xi32> to vector<8x256xf32>
    %11 = arith.truncf %10 : vector<8x256xf32> to vector<8x256xbf16>
    %c0_2 = arith.constant 0 : index
    %c0_3 = arith.constant 0 : index
    %c0_4 = arith.constant 0 : index
    %12 = vector.load %arg3[%c0_2, %c0_3, %c0_4] : memref<3x32x8xbf16, #tpu.memory_space<vmem>>, vector<1x32x8xbf16>
    %13 = vector.shape_cast %12 : vector<1x32x8xbf16> to vector<32x8xbf16>
    %cst_5 = arith.constant dense<0.000000e+00> : vector<32x256xf32>
    %14 = tpu.matmul %13, %11, %cst_5 {dimension_numbers = #tpu.dot_dimension_numbers<[1], [0], [0], [1], [0, 0, 1, 1], [], []>} : vector<32x8xbf16>, vector<8x256xbf16>, vector<32x256xf32> -> vector<32x256xf32>
    %15 = arith.addf %4, %14 : vector<32x256xf32>
    %c0_6 = arith.constant 0 : index
    %c0_7 = arith.constant 0 : index
    %c0_8 = arith.constant 0 : index
    %16 = vector.load %arg4[%c0_6, %c0_7, %c0_8] : memref<3x32x8xbf16, #tpu.memory_space<vmem>>, vector<1x32x8xbf16>
    %17 = vector.shape_cast %16 : vector<1x32x8xbf16> to vector<32x8xbf16>
    %cst_9 = arith.constant dense<0.000000e+00> : vector<32x256xf32>
    %18 = tpu.matmul %17, %11, %cst_9 {dimension_numbers = #tpu.dot_dimension_numbers<[1], [0], [0], [1], [0, 0, 1, 1], [], []>} : vector<32x8xbf16>, vector<8x256xbf16>, vector<32x256xf32> -> vector<32x256xf32>
    %19 = arith.addf %15, %18 : vector<32x256xf32>
    %20 = vector.extract_strided_slice %1 {offsets = [1, 0], sizes = [1, 256], strides = [1, 1]} : vector<3x256xf32> to vector<1x256xf32>
    %21 = math.floor %20 : vector<1x256xf32>
    %22 = vector.broadcast %21 : vector<1x256xf32> to vector<8x256xf32>
    %23 = arith.cmpf oeq, %3, %22 : vector<8x256xf32>
    %24 = arith.extui %23 : vector<8x256xi1> to vector<8x256xi32>
    %25 = arith.sitofp %24 : vector<8x256xi32> to vector<8x256xf32>
    %26 = arith.truncf %25 : vector<8x256xf32> to vector<8x256xbf16>
    %c1 = arith.constant 1 : index
    %c0_10 = arith.constant 0 : index
    %c0_11 = arith.constant 0 : index
    %27 = vector.load %arg3[%c1, %c0_10, %c0_11] : memref<3x32x8xbf16, #tpu.memory_space<vmem>>, vector<1x32x8xbf16>
    %28 = vector.shape_cast %27 : vector<1x32x8xbf16> to vector<32x8xbf16>
    %cst_12 = arith.constant dense<0.000000e+00> : vector<32x256xf32>
    %29 = tpu.matmul %28, %26, %cst_12 {dimension_numbers = #tpu.dot_dimension_numbers<[1], [0], [0], [1], [0, 0, 1, 1], [], []>} : vector<32x8xbf16>, vector<8x256xbf16>, vector<32x256xf32> -> vector<32x256xf32>
    %30 = arith.addf %19, %29 : vector<32x256xf32>
    %c1_13 = arith.constant 1 : index
    %c0_14 = arith.constant 0 : index
    %c0_15 = arith.constant 0 : index
    %31 = vector.load %arg4[%c1_13, %c0_14, %c0_15] : memref<3x32x8xbf16, #tpu.memory_space<vmem>>, vector<1x32x8xbf16>
    %32 = vector.shape_cast %31 : vector<1x32x8xbf16> to vector<32x8xbf16>
    %cst_16 = arith.constant dense<0.000000e+00> : vector<32x256xf32>
    %33 = tpu.matmul %32, %26, %cst_16 {dimension_numbers = #tpu.dot_dimension_numbers<[1], [0], [0], [1], [0, 0, 1, 1], [], []>} : vector<32x8xbf16>, vector<8x256xbf16>, vector<32x256xf32> -> vector<32x256xf32>
    %34 = arith.addf %30, %33 : vector<32x256xf32>
    %35 = vector.extract_strided_slice %1 {offsets = [2, 0], sizes = [1, 256], strides = [1, 1]} : vector<3x256xf32> to vector<1x256xf32>
    %36 = math.floor %35 : vector<1x256xf32>
    %37 = vector.broadcast %36 : vector<1x256xf32> to vector<8x256xf32>
    %38 = arith.cmpf oeq, %3, %37 : vector<8x256xf32>
    %39 = arith.extui %38 : vector<8x256xi1> to vector<8x256xi32>
    %40 = arith.sitofp %39 : vector<8x256xi32> to vector<8x256xf32>
    %41 = arith.truncf %40 : vector<8x256xf32> to vector<8x256xbf16>
    %c2 = arith.constant 2 : index
    %c0_17 = arith.constant 0 : index
    %c0_18 = arith.constant 0 : index
    %42 = vector.load %arg3[%c2, %c0_17, %c0_18] : memref<3x32x8xbf16, #tpu.memory_space<vmem>>, vector<1x32x8xbf16>
    %43 = vector.shape_cast %42 : vector<1x32x8xbf16> to vector<32x8xbf16>
    %cst_19 = arith.constant dense<0.000000e+00> : vector<32x256xf32>
    %44 = tpu.matmul %43, %41, %cst_19 {dimension_numbers = #tpu.dot_dimension_numbers<[1], [0], [0], [1], [0, 0, 1, 1], [], []>} : vector<32x8xbf16>, vector<8x256xbf16>, vector<32x256xf32> -> vector<32x256xf32>
    %45 = arith.addf %34, %44 : vector<32x256xf32>
    %c2_20 = arith.constant 2 : index
    %c0_21 = arith.constant 0 : index
    %c0_22 = arith.constant 0 : index
    %46 = vector.load %arg4[%c2_20, %c0_21, %c0_22] : memref<3x32x8xbf16, #tpu.memory_space<vmem>>, vector<1x32x8xbf16>
    %47 = vector.shape_cast %46 : vector<1x32x8xbf16> to vector<32x8xbf16>
    %cst_23 = arith.constant dense<0.000000e+00> : vector<32x256xf32>
    %48 = tpu.matmul %47, %41, %cst_23 {dimension_numbers = #tpu.dot_dimension_numbers<[1], [0], [0], [1], [0, 0, 1, 1], [], []>} : vector<32x8xbf16>, vector<8x256xbf16>, vector<32x256xf32> -> vector<32x256xf32>
    %49 = arith.addf %45, %48 : vector<32x256xf32>
    %c0_24 = arith.constant 0 : index
    %c0_25 = arith.constant 0 : index
    %c0_26 = arith.constant 0 : index
    %50 = vector.load %arg5[%c0_24, %c0_25, %c0_26] : memref<1x32x256xf32, #tpu.memory_space<vmem>>, vector<1x32x256xf32>
    %51 = vector.shape_cast %50 : vector<1x32x256xf32> to vector<32x256xf32>
    %52 = vector.shape_cast %49 : vector<32x256xf32> to vector<1x32x256xf32>
    tpu.vector_store %arg5[%c0_24, %c0_25, %c0_26], %52 {strides = array<i32>} : memref<1x32x256xf32, #tpu.memory_space<vmem>>, vector<1x32x256xf32>,
    return
  }
  func.func @transform_0(%arg0: i32, %arg1: i32) -> (i32, i32, i32) {
    %c0_i32 = arith.constant 0 : i32
    %c0_i32_0 = arith.constant 0 : i32
    return %arg0, %c0_i32, %arg1 : i32, i32, i32
  }
  func.func @transform_1(%arg0: i32, %arg1: i32) -> (i32, i32, i32) {
    %c0_i32 = arith.constant 0 : i32
    %c0_i32_0 = arith.constant 0 : i32
    %c0_i32_1 = arith.constant 0 : i32
    %c0_i32_2 = arith.constant 0 : i32
    return %c0_i32, %c0_i32_0, %c0_i32_1 : i32, i32, i32
  }
  func.func @transform_2(%arg0: i32, %arg1: i32) -> (i32, i32, i32) {
    %c0_i32 = arith.constant 0 : i32
    %c0_i32_0 = arith.constant 0 : i32
    %c0_i32_1 = arith.constant 0 : i32
    %c0_i32_2 = arith.constant 0 : i32
    return %c0_i32, %c0_i32_0, %c0_i32_1 : i32, i32, i32
  }
  func.func @transform_3(%arg0: i32, %arg1: i32) -> (i32, i32, i32) {
    %c0_i32 = arith.constant 0 : i32
    %c0_i32_0 = arith.constant 0 : i32
    return %arg0, %c0_i32, %arg1 : i32, i32, i32
  }
}

</mosaic_0001>

<bundles_post_ra>
// kernel: tpu_custom_call.1
= control target key start
LH: loop header
LB: loop body
LE: loop exit
PB: predicated region body
PF: predicated region fallthrough
CT: control target
= control target key end

     0   :  { %8 = vsyncpa [#allocation3], 0  ;;  %s1321_s0 = inlined_call_operand.vmem [shape: f32[2,3,256], index: 0, kind: input, shape index: {}]   ;;  %s1322_s1 = inlined_call_operand.vmem [shape: bf16[3,32,8], index: 1, kind: input, shape index: {}]   ;;  %s1323_s2 = inlined_call_operand.vmem [shape: bf16[3,32,8], index: 2, kind: input, shape index: {}]   ;;  %s1324_s3 = inlined_call_operand.hbm [shape: f32[2,32,256], index: 3, kind: output, shape index: {}]  }
   0x1   :  { %10 = vsyncpa [#allocation3 + $0x1], 0  ;;  %s1123_s12 = smov 0   ;;  %s1125_s13 = smov 0  }
   0x2   :  { %s1127_s14 = smov 0   ;;  %s1129_s15 = smov 0  }
   0x3   :  { %s1131_s16 = smov 0   ;;  %s1133_s17 = smov 0  }
   0x4 LB: > { %s882_s18 = sadd.s32 4294967295, %s1096_s17   ;;  %s883_s19 = sadd.s32 4294967294, %s1096_s17   ;;  %s1096_s17 = sphi %s1133_s17, %s16_s17   ;;  %s1092_s16 = sphi %s1131_s16, %s1331_s16   ;;  %s1088_s15 = sphi %s1129_s15, %s1330_s15   ;;  %s1084_s14 = sphi %s1127_s14, %s1329_s14   ;;  %s1080_s13 = sphi %s1125_s13, %s1328_s13   ;;  %s1076_s12 = sphi %s1123_s12, %s1327_s12  }
   0x5   : > { %s28_s20 = sadd.s32 1, %s1092_s16  ;;  %s107_s21 = sadd.s32 1, %s1084_s14 }
   0x6   : > { %p30_p0 = scmp.ge.s32.totalorder %s28_s20, 2  ;;  %p117_p1 = scmp.ne.s32.totalorder %s1084_s14, %s1080_s13 }
   0x7   : > { %p118_p2 = scmp.eq.s32.totalorder %s882_s18, 1  ;;  %p123_p3 = scmp.ne.s32.totalorder %s1080_s13, %s1076_s12 }
   0x8   : > { %s1333_s20 = smov (%p30_p0, %s28_s20), 0  ;;  %p124_p5 = scmp.eq.s32.totalorder %s883_s19, 1 }
   0x9   : > { %p1163_p4 = por %p118_p2, %p117_p1  ;;  %s102_s23 = ssub.s32 %s1092_s16, %s1333_s20 }
   0xa   : > { %p886_p6 = scmp.ge.s32.totalorder %s1096_s17, 1  ;;  %p105_p7 = scmp.eq.s32.totalorder %s102_s23, 0 }
   0xb   : > { %p1170_p8 = por %p124_p5, %p123_p3  ;;  %p161_p9 = scmp.lt.s32.totalorder %s1096_s17, 3 }
   0xc   : > { %s1176_s25 = scalar_select %p105_p7, %s1084_s14, %s107_s21  }
   0xd   : > { %p162_p10 = pnand %p886_p6, %p161_p9 }
   0xe   : > { %p190_p11 = scmp.lt.s32.totalorder (!%p162_p10), %s1088_s15, 1  ;;  %s186_s11 = sand.u32 (!%p162_p10), 1, %s1080_s13  }
   0xf   : > { %165 = sbr.rel (%p162_p10) target bundleno = 296 (0x128), region = 32  ;;  %s887_s18 = sshll.u32 (!%p162_p10), %s186_s11, 6 }
  0x10   : > { %s1255_s19 = scalar_lea.vmem (!%p162_p10), [#allocation2], %s887_s18  ;;  %s948_s21 = sshll.u32 (!%p162_p10), %s1088_s15, 10 }
  0x11   : > { %s803_s23 = sshll.u32 (!%p162_p10), %s1255_s19, 4  ;;  %s1268_s28 = scalar_lea.hbm (!%p162_p10), %s1324_s3, %s948_s21  ;;  %s1270_s23 = int_to_ptr.vmem [resolvable:$true] %s803_s23 }
  0x12   : > { %s1020_s29 = scalar_lea.vmem (!%p162_p10), %s1270_s23, 1024 }
  0x13   : > { %p1021_p12 = scmp.ne.s32.totalorder (!%p162_p10), %s1270_s23, %s1020_s29 }
  0x14   : > { %v202_v0 = vlaneseq  ;;  %v1098_v1 = vmov 0   ;;  %s191_s26 = scalar_select %p190_p11, %s1088_s15, 1  ;;  %vm258_vm0 = vcmask 1043456   ;;  %v1099_v22 = vmov 0.0   ;;  %v1008_v32 = vld [vmem:[%s1323_s2] sm:$0xff]   ;;  %v1010_v39 = vld [vmem:[%s1323_s2 + $0x8] sm:$0xff]  }
  0x15   : > { %297 = vmatprep.mubr.bf16.mxu0 %v1098_v1  ;;  %366 = vmatprep.mubr.bf16.mxu1 %v1098_v1  ;;  %v1009_v33 = vld [vmem:[%s1322_s1] sm:$0xff]   ;;  %vm251_vm6 = vcmask 64512   ;;  %v1011_v40 = vld [vmem:[%s1322_s1 + $0x8] sm:$0xff]   ;;  %v1012_v43 = vld [vmem:[%s1322_s1 + $0x10] sm:$0xff]   ;;  %s1276_s15 = scalar_lea.sflag [#allocation3], %s186_s11  ;;  %p1022_p13 = pnand %p1021_p12, %p1163_p4 }
  0x16   : > { %v203_v2 = vshrl.u32 %v202_v0, 7  ;;  %s947_s27 = sshll.u32 %s191_s26, 3  ;;  %v1013_v44 = vld [vmem:[%s1323_s2 + $0x10] sm:$0xff]   ;;  %v1014_v46 = vld [vmem:[%s1322_s1 + $0x18] sm:$0xff]   ;;  %v1016_v48 = vld [vmem:[%s1322_s1 + $0x20] sm:$0xff]  }
  0x17   : > { %s197_s30 = scalar_lea.vmem %s1321_s0, %s947_s27  ;;  %v1015_v47 = vld [vmem:[%s1323_s2 + $0x18] sm:$0xff]   ;;  %v1017_v49 = vld [vmem:[%s1323_s2 + $0x20] sm:$0xff]   ;;  %v1018_v50 = vld [vmem:[%s1322_s1 + $0x28] sm:$0xff]   ;;  %p1023_p0 = pneg %p1022_p13 }
  0x18   : > { %v209_v3 = vsub.s32 0, %v203_v2  ;;  %v213_v4 = vsub.s32 4, %v203_v2  ;;  %v389_v5 = vsub.s32 1, %v203_v2  ;;  %v393_v6 = vsub.s32 5, %v203_v2  ;;  %v201_v7 = vld [vmem:[%s197_s30] sm:$0x77] }
  0x19   : > { %v205_v8 = vfloor.f32 %v201_v7  ;;  %v589_v9 = vsub.s32 6, %v203_v2  ;;  %v204_v10 = vcvt.s32.f32 %v203_v2  ;;  %v585_v15 = vsub.s32 2, %v203_v2  ;;  %v1019_v51 = vld [vmem:[%s1323_s2 + $0x28] sm:$0xff]   ;;  %s1100_s30 = smov [#allocation2]  }
  0x1a   : > { %s1024_s4 = sshll.u32 %s1100_s30, 4  ;;  %s1025_s4 = int_to_ptr.vmem [resolvable:$false] %s1024_s4 }
  0x1b   : > { %v214_v11 = vrot.slane %v205_v8, %v213_v4  ;;  %v210_v12 = vrot.slane %v205_v8, %v209_v3  ;;  %v394_v13 = vrot.slane %v205_v8, %v393_v6  ;;  %v390_v14 = vrot.slane %v205_v8, %v389_v5  ;;  %s1026_s5 = scalar_lea.vmem %s1025_s4, 2048  ;;  %p1027_p1 = scmp.lt.s32.totalorder %s1270_s23, %s1025_s4 }
  0x1c   : > { %v590_v16 = vrot.slane %v205_v8, %v589_v9  ;;  %v586_v35 = vrot.slane %v205_v8, %v585_v15  ;;  %p1028_p2 = scmp.lt.s32.totalorder %s1026_s5, %s1020_s29 }
  0x1d   : > { %v224_v17 = vrot.slane %v214_v11, %v209_v3  ;;  %v220_v18 = vrot.slane %v210_v12, %v209_v3  ;;  %v404_v19 = vrot.slane %v394_v13, %v389_v5  ;;  %v400_v20 = vrot.slane %v390_v14, %v389_v5 }
  0x1e   : > { %v600_v21 = vrot.slane %v590_v16, %v585_v15  ;;  %v596_v38 = vrot.slane %v586_v35, %v585_v15  ;;  %p1029_p3 = por %p1028_p2, %p1027_p1 }
  0x1f   : > { %vm226_vm1 = vcmp.eq.f32.partialorder %v204_v10, %v224_v17  ;;  %vm225_vm2 = vcmp.eq.f32.partialorder %v204_v10, %v220_v18  ;;  %vm406_vm3 = vcmp.eq.f32.partialorder %v204_v10, %v404_v19  ;;  %vm405_vm4 = vcmp.eq.f32.partialorder %v204_v10, %v400_v20 }
  0x20   : > { %v891_v23 = vsel %vm226_vm1, 1.0, %v1099_v22  ;;  %v890_v24 = vsel %vm225_vm2, 1.0, %v1099_v22  ;;  %v903_v25 = vsel %vm406_vm3, 1.0, %v1099_v22  ;;  %v902_v26 = vsel %vm405_vm4, 1.0, %v1099_v22  ;;  %p1030_p5 = pnand %p1029_p3, %p1023_p0 }
  0x21   : > { %v232_v27 = vpack.c.bf16 %v891_v23, %v891_v23  ;;  %v231_v28 = vpack.c.bf16 %v890_v24, %v890_v24  ;;  %v412_v29 = vpack.c.bf16 %v903_v25, %v903_v25  ;;  %v411_v30 = vpack.c.bf16 %v902_v26, %v902_v26 }
  0x22   : > { %vm602_vm5 = vcmp.eq.f32.partialorder %v204_v10, %v600_v21  ;;  %vm601_vm7 = vcmp.eq.f32.partialorder %v204_v10, %v596_v38 }
  0x23   : > { %894 = vmatprep.subr.msk.bf16.mxu0 %vm258_vm0, %v232_v27  ;;  %899 = vmatprep.subr.msk.bf16.mxu1 %vm258_vm0, %v232_v27  ;;  %v260_v31 = vsel %vm258_vm0, %v231_v28, 0  ;;  %v923_v34 = vsel %vm602_vm5, 1.0, %v1099_v22  ;;  %v435_v36 = vsel %vm258_vm0, %v411_v30, 0  ;;  %v922_v41 = vsel %vm601_vm7, 1.0, %v1099_v22 }
  0x24   : > { %280 = vmatpush1.bf16.msra.mxu0 %v260_v31  ;;  %349 = vmatpush1.bf16.msra.mxu1 %v260_v31  ;;  %v608_v37 = vpack.c.bf16 %v923_v34, %v923_v34  ;;  %v607_v42 = vpack.c.bf16 %v922_v41, %v922_v41 }
  0x25   : > { %910 = vmatprep.subr.msk.bf16.mxu0 %vm258_vm0, %v412_v29  ;;  %919 = vmatprep.subr.msk.bf16.mxu1 %vm258_vm0, %v412_v29 }
  0x26   : > { %v631_v45 = vsel %vm258_vm0, %v607_v42, 0 }
  0x27   : > { %895 = vmatmul.mubr.msk.bf16.vlgmr.msra.gmra.mxu0 %vm251_vm6, %v1008_v32  ;;  %900 = vmatmul.mubr.msk.bf16.vlgmr.msra.gmra.mxu1 %vm251_vm6, %v1009_v33 }
  0x28   : > { %455 = vmatpush1.bf16.msra.mxu0 %v435_v36  ;;  %537 = vmatpush1.bf16.msra.mxu1 %v435_v36 }
  0x29   : > { %307 = vmatprep.mubr.bf16.mxu0 %v1098_v1  ;;  %376 = vmatprep.mubr.bf16.mxu1 %v1098_v1 }
  0x2a   : > { %930 = vmatprep.subr.msk.bf16.mxu0 %vm258_vm0, %v608_v37  ;;  %939 = vmatprep.subr.msk.bf16.mxu1 %vm258_vm0, %v608_v37 }
  0x2f   : > { %896 = vmatmul.mubr.msk.bf16.gmra.mxu0 %vm251_vm6, %v1010_v39  ;;  %901 = vmatmul.mubr.msk.bf16.gmra.mxu1 %vm251_vm6, %v1011_v40 }
  0x30   : > { %472 = vmatprep.mubr.bf16.mxu0 %v1098_v1  ;;  %554 = vmatprep.mubr.bf16.mxu1 %v1098_v1 }
  0x37   : > { %911 = vmatmul.mubr.msk.bf16.vlgmr.msra.gmra.mxu0 %vm251_vm6, %v1012_v43  ;;  %920 = vmatmul.mubr.msk.bf16.vlgmr.msra.gmra.mxu1 %vm251_vm6, %v1013_v44 }
  0x38   : > { %651 = vmatpush1.bf16.msra.mxu0 %v631_v45  ;;  %733 = vmatpush1.bf16.msra.mxu1 %v631_v45 }
  0x39   : > { %482 = vmatprep.mubr.bf16.mxu0 %v1098_v1  ;;  %564 = vmatprep.mubr.bf16.mxu1 %v1098_v1 }
  0x3f   : > { %912 = vmatmul.mubr.msk.bf16.gmra.mxu0 %vm251_vm6, %v1014_v46  ;;  %921 = vmatmul.mubr.msk.bf16.gmra.mxu1 %vm251_vm6, %v1015_v47 }
  0x40   : > { %668 = vmatprep.mubr.bf16.mxu0 %v1098_v1  ;;  %750 = vmatprep.mubr.bf16.mxu1 %v1098_v1 }
  0x47   : > { %931 = vmatmul.mubr.msk.bf16.vlgmr.msra.gmra.mxu0 %vm251_vm6, %v1016_v48  ;;  %940 = vmatmul.mubr.msk.bf16.vlgmr.msra.gmra.mxu1 %vm251_vm6, %v1017_v49 }
  0x48   : > { %678 = vmatprep.mubr.bf16.mxu0 %v1098_v1  ;;  %760 = vmatprep.mubr.bf16.mxu1 %v1098_v1 }
  0x4f   : > { %932 = vmatmul.mubr.msk.bf16.gmra.mxu0 %vm251_vm6, %v1018_v50  ;;  %941 = vmatmul.mubr.msk.bf16.gmra.mxu1 %vm251_vm6, %v1019_v51 }
  0xe7   : > { %v299_v52 = vpop.f32.mrf.mxu0  ;;  %v368_v53 = vpop.f32.mrf.mxu1 }
  0xe8   : > { %v369_v14 = vadd.f32 %v368_v53, %v299_v52 }
  0xe9   : > { %v301_v54 = vpop.f32.mrf.mxu0  ;;  %v370_v55 = vpop.f32.mrf.mxu1 }
  0xea   : > { %v371_v17 = vadd.f32 %v370_v55, %v301_v54 }
  0xeb   : > { %v303_v56 = vpop.f32.mrf.mxu0  ;;  %v372_v57 = vpop.f32.mrf.mxu1 }
  0xec   : > { %v373_v21 = vadd.f32 %v372_v57, %v303_v56 }
  0xed   : > { %v305_v58 = vpop.f32.mrf.mxu0  ;;  %v374_v59 = vpop.f32.mrf.mxu1 }
  0xee   : > { %v375_v25 = vadd.f32 %v374_v59, %v305_v58 }
  0xef   : > { %v309_v60 = vpop.f32.mrf.mxu0  ;;  %v378_v61 = vpop.f32.mrf.mxu1 }
  0xf0   : > { %v379_v30 = vadd.f32 %v378_v61, %v309_v60 }
  0xf1   : > { %v311_v62 = vpop.f32.mrf.mxu0  ;;  %v380_v63 = vpop.f32.mrf.mxu1 }
  0xf2   : > { %v381_v34 = vadd.f32 %v380_v63, %v311_v62 }
  0xf3   : > { %v313_v0 = vpop.f32.mrf.mxu0  ;;  %v382_v1 = vpop.f32.mrf.mxu1 }
  0xf4   : > { %v383_v41 = vadd.f32 %v382_v1, %v313_v0 }
  0xf5   : > { %v315_v2 = vpop.f32.mrf.mxu0  ;;  %v384_v3 = vpop.f32.mrf.mxu1 }
  0xf6   : > { %v385_v48 = vadd.f32 %v384_v3, %v315_v2 }
  0xf7   : > { %v474_v4 = vpop.f32.mrf.mxu0  ;;  %v556_v5 = vpop.f32.mrf.mxu1 }
  0xf8   : > { %v493_v18 = vadd.f32 %v474_v4, %v369_v14 }
  0xf9   : > { %v476_v6 = vpop.f32.mrf.mxu0  ;;  %v558_v7 = vpop.f32.mrf.mxu1 }
  0xfa   : > { %v494_v22 = vadd.f32 %v476_v6, %v371_v17  ;;  %v575_v26 = vadd.f32 %v556_v5, %v493_v18 }
  0xfb   : > { %v478_v8 = vpop.f32.mrf.mxu0  ;;  %v560_v9 = vpop.f32.mrf.mxu1 }
  0xfc   : > { %v495_v27 = vadd.f32 %v478_v8, %v373_v21  ;;  %v576_v31 = vadd.f32 %v558_v7, %v494_v22 }
  0xfd   : > { %v480_v10 = vpop.f32.mrf.mxu0  ;;  %v562_v11 = vpop.f32.mrf.mxu1 }
  0xfe   : > { %v496_v32 = vadd.f32 %v480_v10, %v375_v25  ;;  %v577_v37 = vadd.f32 %v560_v9, %v495_v27 }
  0xff   : > { %v484_v12 = vpop.f32.mrf.mxu0  ;;  %v566_v13 = vpop.f32.mrf.mxu1 }
 0x100   : > { %v497_v38 = vadd.f32 %v484_v12, %v379_v30  ;;  %v578_v44 = vadd.f32 %v562_v11, %v496_v32 }
 0x101   : > { %v486_v15 = vpop.f32.mrf.mxu0  ;;  %v568_v16 = vpop.f32.mrf.mxu1 }
 0x102   : > { %v498_v45 = vadd.f32 %v486_v15, %v381_v34  ;;  %v579_v51 = vadd.f32 %v566_v13, %v497_v38 }
 0x103   : > { %v488_v19 = vpop.f32.mrf.mxu0  ;;  %v570_v20 = vpop.f32.mrf.mxu1 }
 0x104   : > { %v499_v52 = vadd.f32 %v488_v19, %v383_v41  ;;  %v580_v57 = vadd.f32 %v568_v16, %v498_v45 }
 0x105   : > { %v490_v23 = vpop.f32.mrf.mxu0  ;;  %v572_v24 = vpop.f32.mrf.mxu1 }
 0x106   : > { %v500_v58 = vadd.f32 %v490_v23, %v385_v48  ;;  %v581_v63 = vadd.f32 %v570_v20, %v499_v52 }
 0x107   : > { %v670_v28 = vpop.f32.mrf.mxu0  ;;  %v752_v29 = vpop.f32.mrf.mxu1 }
 0x108   : > { %v689_v33 = vadd.f32 %v670_v28, %v575_v26  ;;  %v582_v4 = vadd.f32 %v572_v24, %v500_v58 }
 0x109   : > { %v672_v35 = vpop.f32.mrf.mxu0  ;;  %v754_v36 = vpop.f32.mrf.mxu1 }
 0x10a   : > { %v771_v39 = vadd.f32 %v752_v29, %v689_v33  ;;  %v690_v40 = vadd.f32 %v672_v35, %v576_v31 }
 0x10b   : > { %v674_v42 = vpop.f32.mrf.mxu0  ;;  %v756_v43 = vpop.f32.mrf.mxu1 }
 0x10c   : > { %779 = vst [vmem:[%s1255_s19] sm:$0xff] %v771_v39  ;;  %v772_v46 = vadd.f32 %v754_v36, %v690_v40  ;;  %v691_v47 = vadd.f32 %v674_v42, %v577_v37 }
 0x10d   : > { %v676_v49 = vpop.f32.mrf.mxu0  ;;  %v758_v50 = vpop.f32.mrf.mxu1 }
 0x10e   : > { %780 = vst [vmem:[%s1255_s19 + $0x8] sm:$0xff] %v772_v46  ;;  %v773_v53 = vadd.f32 %v756_v43, %v691_v47  ;;  %v692_v54 = vadd.f32 %v676_v49, %v578_v44 }
 0x10f   : > { %v680_v55 = vpop.f32.mrf.mxu0  ;;  %v762_v56 = vpop.f32.mrf.mxu1 }
 0x110   : > { %781 = vst [vmem:[%s1255_s19 + $0x10] sm:$0xff] %v773_v53  ;;  %v774_v59 = vadd.f32 %v758_v50, %v692_v54  ;;  %v693_v60 = vadd.f32 %v680_v55, %v579_v51 }
 0x111   : > { %v682_v61 = vpop.f32.mrf.mxu0  ;;  %v764_v62 = vpop.f32.mrf.mxu1 }
 0x112   : > { %782 = vst [vmem:[%s1255_s19 + $0x18] sm:$0xff] %v774_v59  ;;  %v775_v0 = vadd.f32 %v762_v56, %v693_v60  ;;  %v694_v1 = vadd.f32 %v682_v61, %v580_v57 }
 0x113   : > { %v684_v2 = vpop.f32.mrf.mxu0  ;;  %v766_v3 = vpop.f32.mrf.mxu1 }
 0x114   : > { %783 = vst [vmem:[%s1255_s19 + $0x20] sm:$0xff] %v775_v0  ;;  %v776_v5 = vadd.f32 %v764_v62, %v694_v1  ;;  %v695_v6 = vadd.f32 %v684_v2, %v581_v63 }
 0x115   : > { %v686_v7 = vpop.f32.mrf.mxu0  ;;  %v768_v10 = vpop.f32.mrf.mxu1 }
 0x116   : > { %784 = vst [vmem:[%s1255_s19 + $0x28] sm:$0xff] %v776_v5  ;;  %v777_v8 = vadd.f32 %v766_v3, %v695_v6  ;;  %v696_v9 = vadd.f32 %v686_v7, %v582_v4 }
 0x118   : > { %785 = vst [vmem:[%s1255_s19 + $0x30] sm:$0xff] %v777_v8  ;;  %v778_v11 = vadd.f32 %v768_v10, %v696_v9 }
 0x11a   : > { %786 = vst [vmem:[%s1255_s19 + $0x38] sm:$0xff] %v778_v11 }
 0x11b   : > { %1033 = shalt.err (!%p1030_p5)
}
 0x11c   : > { %s1034_s6 = scalar_lea.hbm %s1268_s28, 1024  ;;  %s1038_s9 = scalar_lea.hbm %s1324_s3, 2048 }
 0x11d   : > { %p1035_p6 = scmp.ne.s32.totalorder %s1268_s28, %s1034_s6  ;;  %p1039_p10 = scmp.lt.s32.totalorder %s1268_s28, %s1324_s3 }
 0x11e   : > { %p1040_p11 = scmp.lt.s32.totalorder %s1038_s9, %s1034_s6 }
 0x11f   : > { %p1036_p7 = pnand %p1035_p6, %p1163_p4 }
 0x120   : > { %p1041_p12 = por %p1040_p11, %p1039_p10 }
 0x121   : > { %p1037_p9 = pneg %p1036_p7 }
 0x123   : > { %p1042_p13 = pnand %p1041_p12, %p1037_p9 }
 0x125   : > { %1045 = shalt.err (!%p1042_p13)
}
 0x126   : > { %s1101_s18 = smov 256   ;;  %s1102_s19 = smov 16  }
 0x127   : > { %949 = dma.vmem_to_hbm [thread:$0]  (%p1163_p4), %s1270_s23, 1024, %s1268_s28, %s1276_s15, %s1101_s18, %s1101_s18, %s1102_s19  }
 0x128 PF: > { %p955_p0 = scmp.ge.s32.totalorder %s1096_s17, 2  ;;  %s818_s21 = sand.u32 1, %s1076_s12  }
 0x129   : > { %s819_s26 = scalar_lea.sflag [#allocation3], %s818_s21 }
 0x12a   : > { %p952_p1 = pnand %p955_p0, %p1170_p8 }
 0x12c   : > { %p953_p2 = pneg %p952_p1 }
 0x12e   : > { %1071 = dma.done.wait (%p953_p2), %s819_s26, 1024  }
 0x12f   : > { %1073 = vsyncadd (%p953_p2), %s819_s26, 4294966272  ;;  %s16_s17 = sadd.s32 1, %s1096_s17   ;;  %s1327_s12 = smov %s1080_s13 }
 0x130   : > { %p13_p3 = scmp.ge.s32.totalorder %s16_s17, 4   ;;  %s1328_s13 = smov %s1084_s14 }
 0x131   : > { %s1329_s14 = smov %s1176_s25  ;;  %s1330_s15 = smov %s1092_s16 }
 0x132   : > { %s1331_s16 = smov %s1333_s20  ;;  %15 = sbr.rel (!%p13_p3) target bundleno = 4 (0x4), region = 71 }
 0x137   :  { %824 = vsyncpa [#allocation3], 1 }
 0x138   :  { %826 = vsyncpa [#allocation3 + $0x1], 1 }

</bundles_post_ra>
